<compile_context>
chip_gen: v7x
topology: tpu7x:2x2x1
jax: 0.10.0
libtpu: 0.0.40
codegen_flags: <defaults>
</compile_context>

<pallas_src>
import functools

import jax
import jax.numpy as jnp
from jax import lax
from jax.experimental import pallas as pl
from jax.experimental.pallas import tpu as pltpu


_INV_SQRT2 = 0.7071067811865476


def _round_up(n: int, m: int) -> int:
    return ((n + m - 1) // m) * m


def _tpu_tile_defaults():
    """(block_m, block_f, vmem_limit_bytes, num_tensorcores) per generation."""
    try:
        kind = jax.devices()[0].device_kind.lower()
    except Exception:  # pragma: no cover - interpret / odd backends
        kind = ""
    if "v5 lite" in kind or "v5lite" in kind or "v5e" in kind:
        # v5e: bm=256 already ~compute-bound (ridge ~240 FLOP/B); spend the
        # 128 MiB VMEM on a large bf (fewer reduction steps / acc passes).
        return 256, 2048, 100 * 1024 * 1024, 1
    if "7x" in kind or "v7" in kind:
        # v7x: 64 MiB VMEM/TC, ~3.2 TB/s HBM (ridge ~310 FLOP/B), 2 TCs.
        return 512, 512, 48 * 1024 * 1024, 2
    if "v6" in kind:
        # v6e: push to the ~640 FLOP/B ridge; 128 MiB VMEM.
        return 1024, 1024, 100 * 1024 * 1024, 1
    # Unknown chip (v4/v5p/...): conservative middle ground.
    return 512, 1024, 64 * 1024 * 1024, 1


def _ffn_kernel(x_ref, w1_ref, b1_ref, w2_ref, b2_ref, o_ref, acc_ref, *,
                exact_gelu):
    """One (row-tile, d_ff-tile) step of the fused FFN.

    x_ref:  (bm, d_model)     w1_ref: (d_model, bf)   b1_ref: (1, bf)
    w2_ref: (bf, d_model)     b2_ref: (1, d_model)
    o_ref:  (bm, d_model)     acc_ref: (bm, d_model) f32 scratch
    """
    j = pl.program_id(1)

    @pl.when(j == 0)
    def _():
        acc_ref[...] = jnp.zeros_like(acc_ref)

    # linear1 slice: operands in native dtype (bf16 stays bf16 on the MXU),
    # accumulate in f32.
    h = jnp.dot(x_ref[...], w1_ref[...], preferred_element_type=jnp.float32)
    h = h + b1_ref[...].astype(jnp.float32)

    if exact_gelu:
        # Exact GELU (matches torch.nn.GELU default: 0.5*x*(1+erf(x/sqrt2))).
        h = 0.5 * h * (1.0 + lax.erf(h * _INV_SQRT2))
    else:
        # tanh approximation: routes the transcendental to the EUP slot
        # (frees the VALU), small numeric deviation from torch's default.
        h = jax.nn.gelu(h, approximate=True)

    # TODO(synk): dropout is identity in eval mode; training-mode dropout
    # (pltpu.prng_random_bits mask) not implemented here.

    # linear2 partial product, accumulated in f32; hidden cast back to the
    # weight dtype so bf16 weights keep the MXU at bf16 peak.
    acc_ref[...] += jnp.dot(h.astype(w2_ref.dtype), w2_ref[...],
                            preferred_element_type=jnp.float32)

    @pl.when(j == pl.num_programs(1) - 1)
    def _():
        o_ref[...] = (acc_ref[...] + b2_ref[...].astype(jnp.float32)
                      ).astype(o_ref.dtype)


@functools.partial(
    jax.jit,
    static_argnames=("block_m", "block_f", "vmem_limit_bytes", "exact_gelu"))
def feed_forward(x, w1, b1, w2, b2, *, block_m=None, block_f=None,
                 vmem_limit_bytes=None, exact_gelu=True):
    """x: (batch, seq, d_model) -> (batch, seq, d_model)."""
    batch, seq, d_model = x.shape
    d_ff = w1.shape[1]
    M = batch * seq

    auto_bm = block_m is None
    auto_bf = block_f is None
    def_bm, def_bf, def_vmem, num_tc = _tpu_tile_defaults()
    if block_m is None:
        block_m = def_bm
    if block_f is None:
        block_f = def_bf
    if vmem_limit_bytes is None:
        vmem_limit_bytes = def_vmem

    x_bytes = jnp.dtype(x.dtype).itemsize
    w_bytes = jnp.dtype(w1.dtype).itemsize
    budget = int(0.85 * vmem_limit_bytes)   # headroom for compiler temps

    def vmem_needed(bm_, bf_):
        weights = 2 * 2 * d_model * bf_ * w_bytes       # w1,w2 double-buffered
        io = 2 * 2 * bm_ * d_model * x_bytes            # x,out double-buffered
        acc = bm_ * d_model * 4                         # f32 accumulator
        hidden = bm_ * bf_ * (4 + w_bytes)              # f32 h + cast copy
        bias = 2 * 2 * (bf_ + d_model) * 4
        return weights + io + acc + hidden + bias

    # ---- Row tile (bm): multiple of the sublane count, capped by block_m.
    sub = 16 if x.dtype == jnp.bfloat16 else 8
    bm = _round_up(min(block_m, _round_up(M, sub)), sub)

    # Megacore: keep at least num_tc row tiles so both TensorCores get work.
    while num_tc > 1 and bm > sub and _round_up(M, bm) // bm < num_tc:
        bm = _round_up(max(bm // 2, sub), sub)

    # Make sure the smallest possible d_ff tile still fits the VMEM budget.
    min_bf = min(d_ff, 128)
    while bm > sub and vmem_needed(bm, min_bf) > budget:
        bm = _round_up(max(bm // 2, sub), sub)

    M_p = _round_up(M, bm)

    # ---- d_ff tile (bf): prefer full d_ff residency (weights DMA'd once for
    # the entire grid); otherwise a 128-multiple divisor of d_ff (no weight
    # padding in the hot path); padding only as a last-resort fallback.
    full_fits = vmem_needed(bm, d_ff) <= budget
    if full_fits and (auto_bf or d_ff <= block_f):
        bf = d_ff
        d_ff_p = d_ff
    else:
        limit = max(128, _round_up(block_f, 128))
        cand = 0
        c = 128
        while c <= min(d_ff, limit):
            if d_ff % c == 0 and vmem_needed(bm, c) <= budget:
                cand = c
            c += 128
        if cand > 0:
            bf = cand
            d_ff_p = d_ff
        else:
            # TODO(synk): rare fallback pads w1/w2/b1 inside the jitted call
            # (extra HBM traffic); only hit when d_ff has no usable
            # 128-multiple divisor under the VMEM budget.
            bf = max(128, min(_round_up(block_f, 128), _round_up(d_ff, 128)))
            while bf > 128 and vmem_needed(bm, bf) > budget:
                bf -= 128
            d_ff_p = _round_up(d_ff, bf)

    x2d = x.reshape(M, d_model)
    if M_p != M:
        x2d = jnp.pad(x2d, ((0, M_p - M), (0, 0)))
    if d_ff_p != d_ff:
        w1 = jnp.pad(w1, ((0, 0), (0, d_ff_p - d_ff)))
        b1 = jnp.pad(b1, ((0, d_ff_p - d_ff),))
        w2 = jnp.pad(w2, ((0, d_ff_p - d_ff), (0, 0)))
    b1_2d = b1.reshape(1, d_ff_p)
    b2_2d = b2.reshape(1, d_model)

    grid = (M_p // bm, d_ff_p // bf)

    cost = pl.CostEstimate(
        flops=4 * M_p * d_model * d_ff_p,
        transcendentals=M_p * d_ff_p,
        bytes_accessed=(M_p * d_model * x_bytes           # x in
                        + M_p * d_model * x_bytes          # out
                        + 2 * d_model * d_ff_p * w_bytes   # w1 + w2
                        + (d_ff_p + d_model) * 4))         # biases

    kernel = functools.partial(_ffn_kernel, exact_gelu=exact_gelu)

    out2d = pl.pallas_call(
        kernel,
        out_shape=jax.ShapeDtypeStruct((M_p, d_model), x.dtype),
        grid_spec=pltpu.PrefetchScalarGridSpec(
            num_scalar_prefetch=0,
            grid=grid,
            in_specs=[
                pl.BlockSpec((bm, d_model), lambda i, j: (i, 0)),
                pl.BlockSpec((d_model, bf), lambda i, j: (0, j)),
                pl.BlockSpec((1, bf), lambda i, j: (0, j)),
                pl.BlockSpec((bf, d_model), lambda i, j: (j, 0)),
                pl.BlockSpec((1, d_model), lambda i, j: (0, 0)),
            ],
            out_specs=pl.BlockSpec((bm, d_model), lambda i, j: (i, 0)),
            scratch_shapes=[pltpu.VMEM((bm, d_model), jnp.float32)],
        ),
        compiler_params=pltpu.CompilerParams(
            dimension_semantics=("parallel", "arbitrary"),
            vmem_limit_bytes=vmem_limit_bytes,
        ),
        cost_estimate=cost,
    )(x2d, w1, b1_2d, w2, b2_2d)

    return out2d[:M].reshape(batch, seq, d_model)


def init_params(key, d_model, d_ff, dtype=jnp.float32):
    """Deterministic init mimicking nn.Linear (uniform +/- 1/sqrt(fan_in))."""
    k1, k2, k3, k4 = jax.random.split(key, 4)
    lim1 = 1.0 / jnp.sqrt(d_model)
    lim2 = 1.0 / jnp.sqrt(d_ff)
    w1 = jax.random.uniform(k1, (d_model, d_ff), dtype, -lim1, lim1)
    b1 = jax.random.uniform(k2, (d_ff,), dtype, -lim1, lim1)
    w2 = jax.random.uniform(k3, (d_ff, d_model), dtype, -lim2, lim2)
    b2 = jax.random.uniform(k4, (d_model,), dtype, -lim2, lim2)
    return w1, b1, w2, b2


def _reference(x, w1, b1, w2, b2):
    """Plain-JAX eval-mode FFN (dropout = identity), f32-accurate matmuls."""
    h = jnp.dot(x, w1, precision=lax.Precision.HIGHEST) + b1
    h = 0.5 * h * (1.0 + lax.erf(h * _INV_SQRT2))
    return jnp.dot(h, w2, precision=lax.Precision.HIGHEST) + b2


if __name__ == "__main__":
    key = jax.random.PRNGKey(0)

    # Check 1: toy shapes (auto tile selection; weights fully VMEM-resident,
    # single d_ff step).
    batch, seq, d_model, d_ff = 2, 8, 32, 64
    key, kx, kp = jax.random.split(key, 3)
    x = jax.random.normal(kx, (batch, seq, d_model), jnp.float32)
    w1, b1, w2, b2 = init_params(kp, d_model, d_ff)

    out = jax.block_until_ready(feed_forward(x, w1, b1, w2, b2))
    ref = _reference(x, w1, b1, w2, b2)
    assert out.shape == (batch, seq, d_model)
    assert jnp.allclose(out, ref, atol=1e-4, rtol=1e-4)

    # Check 2: ragged M (24 -> padded 32) and a forced 2-step d_ff reduction
    # (d_ff=256, block_f=128) exercising the f32 accumulator path; bf=128 is
    # a divisor of d_ff so no weight padding happens.
    batch2, seq2, d_model2, d_ff2 = 2, 12, 128, 256
    key, kx2, kp2 = jax.random.split(key, 3)
    x2 = jax.random.normal(kx2, (batch2, seq2, d_model2), jnp.float32)
    w1b, b1b, w2b, b2b = init_params(kp2, d_model2, d_ff2)

    out2 = jax.block_until_ready(
        feed_forward(x2, w1b, b1b, w2b, b2b, block_m=16, block_f=128))
    ref2 = _reference(x2, w1b, b1b, w2b, b2b)
    assert out2.shape == (batch2, seq2, d_model2)
    assert jnp.allclose(out2, ref2, atol=1e-4, rtol=1e-4)

    print("KERNEL_OK")
</pallas_src>

<mosaic_0001>
module attributes {stable_mosaic.version = 11 : i64} {
  func.func @_ffn_kernel(%arg0: i32, %arg1: i32, %arg2: memref<16x32xf32, #tpu.memory_space<vmem>>, %arg3: memref<32x64xf32, #tpu.memory_space<vmem>>, %arg4: memref<1x64xf32, #tpu.memory_space<vmem>>, %arg5: memref<64x32xf32, #tpu.memory_space<vmem>>, %arg6: memref<1x32xf32, #tpu.memory_space<vmem>>, %arg7: memref<16x32xf32, #tpu.memory_space<vmem>>, %arg8: memref<16x32xf32, #tpu.memory_space<vmem>>) attributes {dimension_semantics = [#tpu.dimension_semantics<parallel>, #tpu.dimension_semantics<arbitrary>], iteration_bounds = array<i64: 1, 1>, scalar_prefetch = 0 : i64, scratch_operands = 1 : i64, tpu.core_type = #tpu.core_type<tc>, window_params = [{transform_indices = @transform_0, window_bounds = array<i64: 16, 32>}, {transform_indices = @transform_1, window_bounds = array<i64: 32, 64>}, {transform_indices = @transform_2, window_bounds = array<i64: 1, 64>}, {transform_indices = @transform_3, window_bounds = array<i64: 64, 32>}, {pipeline_mode = #tpu.pipeline_mode<synchronous>, transform_indices = @transform_4, window_bounds = array<i64: 1, 32>}, {transform_indices = @transform_5, window_bounds = array<i64: 16, 32>}]} {
    %c0_i32 = arith.constant 0 : i32
    %0 = arith.cmpi eq, %arg1, %c0_i32 : i32
    %1 = arith.extui %0 : i1 to i32
    %c0_i32_0 = arith.constant 0 : i32
    %2 = arith.cmpi ne, %1, %c0_i32_0 : i32
    scf.if %2 {
      %cst_18 = arith.constant 0.000000e+00 : f32
      %25 = vector.broadcast %cst_18 : f32 to vector<16x32xf32>
      %c0_19 = arith.constant 0 : index
      %c0_20 = arith.constant 0 : index
      %26 = vector.load %arg8[%c0_19, %c0_20] : memref<16x32xf32, #tpu.memory_space<vmem>>, vector<16x32xf32>
      tpu.vector_store %arg8[%c0_19, %c0_20], %25 {strides = array<i32>} : memref<16x32xf32, #tpu.memory_space<vmem>>, vector<16x32xf32>,
    } else {
    }
    %c0 = arith.constant 0 : index
    %c0_1 = arith.constant 0 : index
    %3 = vector.load %arg2[%c0, %c0_1] : memref<16x32xf32, #tpu.memory_space<vmem>>, vector<16x32xf32>
    %c0_2 = arith.constant 0 : index
    %c0_3 = arith.constant 0 : index
    %4 = vector.load %arg3[%c0_2, %c0_3] : memref<32x64xf32, #tpu.memory_space<vmem>>, vector<32x64xf32>
    %cst = arith.constant dense<0.000000e+00> : vector<16x64xf32>
    %5 = tpu.matmul %3, %4, %cst {dimension_numbers = #tpu.dot_dimension_numbers<[1], [0], [0], [1], [0, 0, 1, 1], [], []>} : vector<16x32xf32>, vector<32x64xf32>, vector<16x64xf32> -> vector<16x64xf32>
    %c0_4 = arith.constant 0 : index
    %c0_5 = arith.constant 0 : index
    %6 = vector.load %arg4[%c0_4, %c0_5] : memref<1x64xf32, #tpu.memory_space<vmem>>, vector<1x64xf32>
    %7 = vector.broadcast %6 : vector<1x64xf32> to vector<16x64xf32>
    %8 = arith.addf %5, %7 : vector<16x64xf32>
    %cst_6 = arith.constant 5.000000e-01 : f32
    %9 = vector.broadcast %cst_6 : f32 to vector<16x64xf32>
    %10 = arith.mulf %9, %8 : vector<16x64xf32>
    %cst_7 = arith.constant 0.707106769 : f32
    %11 = vector.broadcast %cst_7 : f32 to vector<16x64xf32>
    %12 = arith.mulf %8, %11 : vector<16x64xf32>
    %13 = math.erf %12 : vector<16x64xf32>
    %cst_8 = arith.constant 1.000000e+00 : f32
    %14 = vector.broadcast %cst_8 : f32 to vector<16x64xf32>
    %15 = arith.addf %14, %13 : vector<16x64xf32>
    %16 = arith.mulf %10, %15 : vector<16x64xf32>
    %c0_9 = arith.constant 0 : index
    %c0_10 = arith.constant 0 : index
    %17 = vector.load %arg8[%c0_9, %c0_10] : memref<16x32xf32, #tpu.memory_space<vmem>>, vector<16x32xf32>
    %c0_11 = arith.constant 0 : index
    %c0_12 = arith.constant 0 : index
    %18 = vector.load %arg5[%c0_11, %c0_12] : memref<64x32xf32, #tpu.memory_space<vmem>>, vector<64x32xf32>
    %cst_13 = arith.constant dense<0.000000e+00> : vector<16x32xf32>
    %19 = tpu.matmul %16, %18, %cst_13 {dimension_numbers = #tpu.dot_dimension_numbers<[1], [0], [0], [1], [0, 0, 1, 1], [], []>} : vector<16x64xf32>, vector<64x32xf32>, vector<16x32xf32> -> vector<16x32xf32>
    %20 = arith.addf %17, %19 : vector<16x32xf32>
    %c0_14 = arith.constant 0 : index
    %c0_15 = arith.constant 0 : index
    %21 = vector.load %arg8[%c0_14, %c0_15] : memref<16x32xf32, #tpu.memory_space<vmem>>, vector<16x32xf32>
    tpu.vector_store %arg8[%c0_14, %c0_15], %20 {strides = array<i32>} : memref<16x32xf32, #tpu.memory_space<vmem>>, vector<16x32xf32>,
    %c0_i32_16 = arith.constant 0 : i32
    %22 = arith.cmpi eq, %arg1, %c0_i32_16 : i32
    %23 = arith.extui %22 : i1 to i32
    %c0_i32_17 = arith.constant 0 : i32
    %24 = arith.cmpi ne, %23, %c0_i32_17 : i32
    scf.if %24 {
      %c0_18 = arith.constant 0 : index
      %c0_19 = arith.constant 0 : index
      %25 = vector.load %arg8[%c0_18, %c0_19] : memref<16x32xf32, #tpu.memory_space<vmem>>, vector<16x32xf32>
      %c0_20 = arith.constant 0 : index
      %c0_21 = arith.constant 0 : index
      %26 = vector.load %arg6[%c0_20, %c0_21] : memref<1x32xf32, #tpu.memory_space<vmem>>, vector<1x32xf32>
      %27 = vector.broadcast %26 : vector<1x32xf32> to vector<16x32xf32>
      %28 = arith.addf %25, %27 : vector<16x32xf32>
      %c0_22 = arith.constant 0 : index
      %c0_23 = arith.constant 0 : index
      %29 = vector.load %arg7[%c0_22, %c0_23] : memref<16x32xf32, #tpu.memory_space<vmem>>, vector<16x32xf32>
      tpu.vector_store %arg7[%c0_22, %c0_23], %28 {strides = array<i32>} : memref<16x32xf32, #tpu.memory_space<vmem>>, vector<16x32xf32>,
    } else {
    }
    return
  }
  func.func @transform_0(%arg0: i32, %arg1: i32) -> (i32, i32) {
    %c0_i32 = arith.constant 0 : i32
    %c0_i32_0 = arith.constant 0 : i32
    return %arg0, %c0_i32 : i32, i32
  }
  func.func @transform_1(%arg0: i32, %arg1: i32) -> (i32, i32) {
    %c0_i32 = arith.constant 0 : i32
    %c0_i32_0 = arith.constant 0 : i32
    return %c0_i32, %arg1 : i32, i32
  }
  func.func @transform_2(%arg0: i32, %arg1: i32) -> (i32, i32) {
    %c0_i32 = arith.constant 0 : i32
    %c0_i32_0 = arith.constant 0 : i32
    return %c0_i32, %arg1 : i32, i32
  }
  func.func @transform_3(%arg0: i32, %arg1: i32) -> (i32, i32) {
    %c0_i32 = arith.constant 0 : i32
    %c0_i32_0 = arith.constant 0 : i32
    return %arg1, %c0_i32 : i32, i32
  }
  func.func @transform_4(%arg0: i32, %arg1: i32) -> (i32, i32) {
    %c0_i32 = arith.constant 0 : i32
    %c0_i32_0 = arith.constant 0 : i32
    %c0_i32_1 = arith.constant 0 : i32
    return %c0_i32, %c0_i32_0 : i32, i32
  }
  func.func @transform_5(%arg0: i32, %arg1: i32) -> (i32, i32) {
    %c0_i32 = arith.constant 0 : i32
    %c0_i32_0 = arith.constant 0 : i32
    return %arg0, %c0_i32 : i32, i32
  }
}

</mosaic_0001>

<bundles_post_ra>
// kernel: feed_forward.1
= control target key start
LH: loop header
LB: loop body
LE: loop exit
PB: predicated region body
PF: predicated region fallthrough
CT: control target
= control target key end

     0   :  { %10 = vsyncpa [#allocation4], 0  ;;  %s695_s0 = inlined_call_operand.hbm [shape: f32[16,32], index: 0, kind: input, shape index: {}]   ;;  %s696_s1 = inlined_call_operand.hbm [shape: f32[32,64], index: 1, kind: input, shape index: {}]   ;;  %s697_s2 = inlined_call_operand.hbm [shape: f32[1,64], index: 2, kind: input, shape index: {}]   ;;  %s698_s3 = inlined_call_operand.hbm [shape: f32[64,32], index: 3, kind: input, shape index: {}]   ;;  %s699_s4 = inlined_call_operand.hbm [shape: f32[1,32], index: 4, kind: input, shape index: {}]   ;;  %s700_s5 = inlined_call_operand.hbm [shape: f32[16,32], index: 5, kind: output, shape index: {}]  }
   0x1   :  { %11 = vsyncpa [#allocation7], 0 }
   0x2   :  { %12 = vsyncpa [#allocation10], 0 }
   0x3   :  { %13 = vsyncpa [#allocation5], 0  ;;  %s557_s18 = smov [#allocation6]   ;;  %s558_s20 = smov [#allocation9]  }
   0x4   :  { %s31_s19 = sshll.u32 %s557_s18, 4  ;;  %s53_s21 = sshll.u32 %s558_s20, 4  ;;  %s32_s19 = int_to_ptr.vmem [resolvable:$true] %s31_s19  ;;  %s596_s21 = int_to_ptr.vmem [resolvable:$true] %s53_s21 }
   0x5   :  { %s417_s24 = scalar_lea.hbm %s696_s1, 512 }
   0x6   :  { %p418_p0 = scmp.ne.s32.totalorder %s696_s1, %s417_s24  ;;  %p421_p1 = scmp.lt.u32.totalorder %s417_s24, %s696_s1 }
   0x8   :  { %p423_p2 = pnand %p421_p1, %p418_p0 }
   0xa   :  { %426 = shalt.err (!%p423_p2)
}
   0xb   :  { %s427_s29 = scalar_lea.vmem %s32_s19, 512  ;;  %p432_p4 = scmp.lt.s32.totalorder %s32_s19, %s32_s19 }
   0xc   :  { %p428_p3 = scmp.ne.s32.totalorder %s32_s19, %s427_s29  ;;  %p433_p5 = scmp.lt.s32.totalorder %s427_s29, %s427_s29 }
   0xe   :  { %p434_p6 = por %p433_p5, %p432_p4 }
  0x10   :  { %p435_p7 = pnand %p434_p6, %p428_p3 }
  0x12   :  { %438 = shalt.err (!%p435_p7)
}
  0x13   :  { %s559_s30 = smov 128   ;;  %s560_s6 = smov 8  }
  0x14   :  { %37 = dma.hbm_to_vmem [thread:$0]  %s696_s1, 512, %s32_s19, [#allocation7], %s559_s30, %s559_s30, %s560_s6  }
  0x15   :  { %s439_s11 = scalar_lea.hbm %s698_s3, 1024 }
  0x16   :  { %p440_p8 = scmp.ne.s32.totalorder %s698_s3, %s439_s11  ;;  %p443_p9 = scmp.lt.u32.totalorder %s439_s11, %s698_s3 }
  0x18   :  { %p445_p10 = pnand %p443_p9, %p440_p8 }
  0x1a   :  { %448 = shalt.err (!%p445_p10)
}
  0x1b   :  { %s449_s16 = scalar_lea.vmem %s596_s21, 1024  ;;  %p454_p12 = scmp.lt.s32.totalorder %s596_s21, %s596_s21 }
  0x1c   :  { %p450_p11 = scmp.ne.s32.totalorder %s596_s21, %s449_s16  ;;  %p455_p13 = scmp.lt.s32.totalorder %s449_s16, %s449_s16 }
  0x1e   :  { %p456_p0 = por %p455_p13, %p454_p12 }
  0x20   :  { %p457_p1 = pnand %p456_p0, %p450_p11 }
  0x22   :  { %460 = shalt.err (!%p457_p1)
}
  0x23   :  { %59 = dma.hbm_to_vmem [thread:$0]  %s698_s3, 1024, %s596_s21, [#allocation10], %s559_s30, %s559_s30, %s560_s6  }
  0x24   :  { %s561_s18 = smov [#allocation3]   ;;  %s562_s20 = smov [#allocation8]  }
  0x25   :  { %s19_s19 = sshll.u32 %s561_s18, 4  ;;  %s44_s22 = sshll.u32 %s562_s20, 4  ;;  %s20_s19 = int_to_ptr.vmem [resolvable:$true] %s19_s19  ;;  %s45_s22 = int_to_ptr.vmem [resolvable:$true] %s44_s22 }
  0x26   :  { %s461_s25 = scalar_lea.hbm %s695_s0, 256 }
  0x27   :  { %p462_p2 = scmp.ne.s32.totalorder %s695_s0, %s461_s25  ;;  %p465_p3 = scmp.lt.u32.totalorder %s461_s25, %s695_s0 }
  0x29   :  { %p467_p4 = pnand %p465_p3, %p462_p2 }
  0x2b   :  { %470 = shalt.err (!%p467_p4)
}
  0x2c   :  { %s471_s3 = scalar_lea.vmem %s20_s19, 256  ;;  %p476_p6 = scmp.lt.s32.totalorder %s20_s19, %s20_s19 }
  0x2d   :  { %p472_p5 = scmp.ne.s32.totalorder %s20_s19, %s471_s3  ;;  %p477_p7 = scmp.lt.s32.totalorder %s471_s3, %s471_s3 }
  0x2f   :  { %p478_p8 = por %p477_p7, %p476_p6 }
  0x31   :  { %p479_p9 = pnand %p478_p8, %p472_p5 }
  0x33   :  { %482 = shalt.err (!%p479_p9)
}
  0x34   :  { %25 = dma.hbm_to_vmem [thread:$0]  %s695_s0, 256, %s20_s19, [#allocation4], %s559_s30, %s559_s30, %s560_s6  }
  0x35   :  { %s483_s10 = scalar_lea.hbm %s697_s2, 16 }
  0x36   :  { %p484_p10 = scmp.ne.s32.totalorder %s697_s2, %s483_s10  ;;  %p487_p11 = scmp.lt.u32.totalorder %s483_s10, %s697_s2 }
  0x38   :  { %p489_p12 = pnand %p487_p11, %p484_p10 }
  0x3a   :  { %492 = shalt.err (!%p489_p12)
}
  0x3b   :  { %s493_s15 = scalar_lea.vmem %s45_s22, 16  ;;  %s497_s16 = scalar_lea.vmem %s45_s22, 32 }
  0x3c   :  { %p494_p13 = scmp.ne.s32.totalorder %s45_s22, %s493_s15  ;;  %p498_p0 = scmp.lt.s32.totalorder %s45_s22, %s45_s22 }
  0x3d   :  { %p499_p1 = scmp.lt.s32.totalorder %s497_s16, %s493_s15 }
  0x3f   :  { %p500_p2 = por %p499_p1, %p498_p0 }
  0x41   :  { %p501_p3 = pnand %p500_p2, %p494_p13 }
  0x43   :  { %504 = shalt.err (!%p501_p3)
}
  0x44   :  { %47 = dma.hbm_to_vmem [thread:$0]  %s697_s2, 16, %s45_s22, [#allocation7]  }
  0x45   :  { %s563_s17 = smov [#allocation11]   ;;  %s505_s23 = scalar_lea.hbm %s699_s4, 16 }
  0x46   :  { %s66_s18 = sshll.u32 %s563_s17, 4  ;;  %p506_p4 = scmp.ne.s32.totalorder %s699_s4, %s505_s23  ;;  %s67_s18 = int_to_ptr.vmem [resolvable:$true] %s66_s18 }
  0x47   :  { %p509_p5 = scmp.lt.u32.totalorder %s505_s23, %s699_s4 }
  0x49   :  { %p511_p6 = pnand %p509_p5, %p506_p4 }
  0x4b   :  { %514 = shalt.err (!%p511_p6)
}
  0x4c   :  { %s515_s28 = scalar_lea.vmem %s67_s18, 16  ;;  %s519_s2 = scalar_lea.vmem %s67_s18, 32 }
  0x4d   :  { %p516_p7 = scmp.ne.s32.totalorder %s67_s18, %s515_s28  ;;  %p520_p8 = scmp.lt.s32.totalorder %s67_s18, %s67_s18 }
  0x4e   :  { %p521_p9 = scmp.lt.s32.totalorder %s519_s2, %s515_s28 }
  0x50   :  { %p522_p10 = por %p521_p9, %p520_p8 }
  0x52   :  { %p523_p11 = pnand %p522_p10, %p516_p7 }
  0x54   :  { %526 = shalt.err (!%p523_p11)
}
  0x55   :  { %69 = dma.hbm_to_vmem [thread:$0]  %s699_s4, 16, %s67_s18, [#allocation10]  }
  0x56   :  { %549 = dma.done.wait [#allocation4], 256  }
  0x57   :  { %550 = vsyncadd [#allocation4], 4294967040 }
  0x58   :  { %551 = dma.done.wait [#allocation7], 528  }
  0x59   :  { %552 = vsyncadd [#allocation7], 4294966768 }
  0x5a   :  { %553 = dma.done.wait [#allocation10], 1040  }
  0x5b   :  { %554 = vsyncadd [#allocation10], 4294966256  ;;  %vm89_vm0 = vcmask 261120   ;;  %v94_v0 = vld [vmem:[#allocation6] sm:$0xff]  ;;  %v95_v1 = vld [vmem:[#allocation6 + $0x8] sm:$0xff]  ;;  %v564_v20 = vmov 0.0  }
  0x5c   :  { %v96_v2 = vld [vmem:[#allocation6 + $0x10] sm:$0xff]  ;;  %v380_v3 = vpack.c.bf16 %v95_v1, %v94_v0  ;;  %v97_v4 = vld [vmem:[#allocation6 + $0x18] sm:$0xff]  ;;  %v199_v8 = vld [vmem:[#allocation9] sm:$0xff]  ;;  %91 = vst.msk [vmem:[#allocation2 + $0x8] sm:$0xff] %vm89_vm0, %v564_v20  ;;  %vm207_vm1 = vcmask 523264   ;;  %s565_s4 = smov [#allocation12]  }
  0x5d   :  { %v92_v5 = vld [vmem:[#allocation3] sm:$0xff]  ;;  %v384_v6 = vpack.c.bf16 %v97_v4, %v96_v2  ;;  %v93_v7 = vld [vmem:[#allocation3 + $0x8] sm:$0xff]  ;;  %v203_v14 = vld [vmem:[#allocation9 + $0x20] sm:$0xff]  ;;  %90 = vst.msk [vmem:[#allocation2] sm:$0xff] %vm89_vm0, %v564_v20  ;;  %s314_s3 = sshll.u32 %s565_s4, 4  ;;  %s315_s3 = int_to_ptr.vmem [resolvable:$true] %s314_s3 }
  0x5e   :  { %358 = vmatprep.mubr.msk.f32.mxu0 %vm89_vm0, %v92_v5  ;;  %381 = vmatprep.subr.bf16.mxu0 %v380_v3  ;;  %v200_v9 = vld [vmem:[#allocation9 + $0x8] sm:$0xff]  ;;  %v201_v11 = vld [vmem:[#allocation9 + $0x10] sm:$0xff]  ;;  %v202_v12 = vld [vmem:[#allocation9 + $0x18] sm:$0xff]  ;;  %s527_s21 = scalar_lea.vmem %s315_s3, 256  ;;  %p532_p13 = scmp.lt.s32.totalorder %s315_s3, %s315_s3 }
  0x5f   :  { %383 = vmatpush3.bf16.msra.mxu0 %v380_v3  ;;  %v388_v10 = vpack.c.bf16 %v200_v9, %v199_v8  ;;  %v392_v13 = vpack.c.bf16 %v202_v12, %v201_v11  ;;  %v204_v15 = vld [vmem:[#allocation9 + $0x28] sm:$0xff]  ;;  %v205_v17 = vld [vmem:[#allocation9 + $0x30] sm:$0xff]  ;;  %v206_v18 = vld [vmem:[#allocation9 + $0x38] sm:$0xff]  ;;  %p528_p12 = scmp.ne.s32.totalorder %s315_s3, %s527_s21  ;;  %p533_p0 = scmp.lt.s32.totalorder %s527_s21, %s527_s21 }
  0x60   :  { %385 = vmatprep.subr.bf16.mxu0 %v384_v6  ;;  %v396_v16 = vpack.c.bf16 %v204_v15, %v203_v14  ;;  %v400_v19 = vpack.c.bf16 %v206_v18, %v205_v17  ;;  %v328_v21 = vld [vmem:[#allocation8] ss:$0 sm:$0xff]  ;;  %v333_v42 = vld [vmem:[#allocation11] ss:$0 sm:$0xff] }
  0x61   :  { %389 = vmatprep.subr.bf16.mxu1 %v388_v10  ;;  %p534_p1 = por %p533_p0, %p532_p13 }
  0x62   :  { %391 = vmatpush3.bf16.msra.mxu1 %v388_v10 }
  0x63   :  { %387 = vmatpush3.bf16.msra.mxu0 %v384_v6  ;;  %393 = vmatprep.subr.bf16.mxu1 %v392_v13  ;;  %v198_v36 = vld [vmem:[#allocation2 + $0x8] sm:$0xff]  ;;  %p535_p2 = pnand %p534_p1, %p528_p12 }
  0x64   :  { %v197_v37 = vld [vmem:[#allocation2] sm:$0xff] }
  0x66   :  { %359 = vmatmul.mubr.msk.f32.vlgmr.msra.gmra.mrb[0].mxu0 %vm89_vm0, %v93_v7  ;;  %395 = vmatpush3.bf16.msra.mxu1 %v392_v13 }
  0x67   :  { %397 = vmatprep.subr.bf16.mxu1 %v396_v16 }
  0x6a   :  { %399 = vmatpush3.bf16.msra.mxu1 %v396_v16 }
  0x6b   :  { %401 = vmatprep.subr.bf16.mxu1 %v400_v19 }
  0x6e   :  { %403 = vmatpush3.bf16.msra.mxu1 %v400_v19 }
 0x139   :  { %v360_v22 = vpop.f32.mrb[0].mxu0 }
 0x13a   :  { %v184_v23 = vadd.f32 %v360_v22, %v328_v21  ;;  %v178_v24 = vpop.f32.mrb[1].mxu0 }
 0x13b   :  { %v179_v25 = vadd.f32 %v328_v21, %v178_v24 }
 0x13c   :  { %v190_v26 = vmul.f32 0.70710677, %v184_v23  ;;  %v188_v33 = vmul.f32 0.5, %v184_v23 }
 0x13d   :  { %v189_v27 = vmul.f32 0.70710677, %v179_v25  ;;  %v187_v31 = vmul.f32 0.5, %v179_v25 }
 0x13e   :  { %413 = verf.f32 %v190_v26 }
 0x13f   :  { %415 = verf.f32 %v189_v27 }
 0x148   :  { %v414_v28 = vpop.eup %413 }
 0x149   :  { %v416_v29 = vpop.eup %415  ;;  %v194_v30 = vadd.f32 1.0, %v414_v28 }
 0x14a   :  { %v193_v32 = vadd.f32 1.0, %v416_v29 }
 0x14b   :  { %v196_v35 = vmul.f32 %v194_v30, %v188_v33 }
 0x14c   :  { %v195_v34 = vmul.f32 %v193_v32, %v187_v31 }
 0x14e   :  { %377 = vmatprep.mubr.msk.f32.mxu1 %vm207_vm1, %v195_v34 }
 0x14f   :  { %378 = vmatmul.mubr.msk.f32.vlgmr.msra.gmra.mrb[0].mxu1 %vm207_vm1, %v196_v35 }
 0x222   :  { %v379_v38 = vpop.f32.mrb[0].mxu1 }
 0x223   :  { %v290_v39 = vadd.f32 %v379_v38, %v198_v36  ;;  %v280_v40 = vpop.f32.mrb[1].mxu1 }
 0x224   :  { %v289_v41 = vadd.f32 %v280_v40, %v197_v37 }
 0x225   :  { %292 = vst.msk [vmem:[#allocation2 + $0x8] sm:$0xff] %vm89_vm0, %v290_v39 }
 0x226   :  { %291 = vst.msk [vmem:[#allocation2] sm:$0xff] %vm89_vm0, %v289_v41 }
 0x22c   :  { %v297_v43 = vld [vmem:[#allocation2 + $0x8] sm:$0xff] }
 0x22d   :  { %v296_v44 = vld [vmem:[#allocation2] sm:$0xff]  ;;  %v306_v45 = vadd.f32 %v333_v42, %v297_v43 }
 0x22e   :  { %v305_v46 = vadd.f32 %v333_v42, %v296_v44 }
 0x22f   :  { %308 = vst.msk [vmem:[#allocation12 + $0x8] sm:$0xff] %vm89_vm0, %v306_v45 }
 0x230   :  { %307 = vst.msk [vmem:[#allocation12] sm:$0xff] %vm89_vm0, %v305_v46 }
 0x231   :  { %538 = shalt.err (!%p535_p2)
}
 0x232   :  { %s539_s9 = scalar_lea.hbm %s700_s5, 256 }
 0x233   :  { %p540_p3 = scmp.ne.s32.totalorder %s700_s5, %s539_s9  ;;  %p543_p4 = scmp.lt.u32.totalorder %s539_s9, %s700_s5 }
 0x235   :  { %p545_p5 = pnand %p543_p4, %p540_p3 }
 0x237   :  { %548 = shalt.err (!%p545_p5)
}
 0x238   :  { %320 = dma.vmem_to_hbm [thread:$0]  %s315_s3, 256, %s700_s5, [#allocation5], %s559_s30, %s559_s30, %s560_s6  }
 0x239   :  { %555 = dma.done.wait [#allocation5], 256  }
 0x23a   :  { %556 = vsyncadd [#allocation5], 4294967040 }
 0x23b   :  { %324 = vsyncpa [#allocation4], 1 }
 0x23c   :  { %325 = vsyncpa [#allocation7], 1 }
 0x23d   :  { %326 = vsyncpa [#allocation10], 1 }
 0x23e   :  { %327 = vsyncpa [#allocation5], 1 }

</bundles_post_ra>
